<compile_context>
chip_gen: v7x
topology: tpu7x:2x2x1
jax: 0.10.0
libtpu: 0.0.40
codegen_flags: <defaults>
</compile_context>

<pallas_src>
import jax
import jax.numpy as jnp
from jax.experimental import pallas as pl
from jax.experimental.pallas import tpu as pltpu

NEG_SLOPE = 0.01          # PyTorch nn.LeakyReLU default
K_IN = 28 * 28            # 784
H1 = 512
H2 = 256


def _leaky_relu(x):
    return jnp.where(x > 0, x, NEG_SLOPE * x)


def _round_up(x, m):
    return (x + m - 1) // m * m


def discriminator_kernel(x_ref, w1_ref, b1_ref, w2_ref, b2_ref, w3_ref, b3_ref,
                         o_ref):
    # x arrives as f32 straight from HBM; cast to bf16 on the VPU here so the
    # wrapper never makes a separate cast/pad pass over x.
    x = x_ref[...].astype(jnp.bfloat16)                     # (TM, 784) bf16

    # Layer 1: bf16 x bf16 -> f32 on the MXU, bias + LeakyReLU in f32 (VPU).
    h1 = jnp.dot(x, w1_ref[...], preferred_element_type=jnp.float32)
    h1 = _leaky_relu(h1 + b1_ref[...])                      # (TM, 512) f32

    # Layer 2.
    h2 = jnp.dot(h1.astype(jnp.bfloat16), w2_ref[...],
                 preferred_element_type=jnp.float32)
    h2 = _leaky_relu(h2 + b2_ref[...])                      # (TM, 256) f32

    # Layer 3 (N=1): broadcast-multiply + lane reduction instead of an MXU
    # matmul that would occupy a single result lane.
    logit = jnp.sum(h2 * w3_ref[...], axis=-1, keepdims=True) + b3_ref[0, 0]

    o_ref[...] = jax.nn.sigmoid(logit)                      # (TM, 1) f32


def prepare_params(params):
    """One-time packing of PyTorch-style params for the kernel.

    w1: (784,512) -> bf16
    w2: (512,256) -> bf16
    w3: (256,1)   -> (1,256) f32 (VPU broadcast row)
    b3: (1,1)     -> f32 SMEM scalar
    """
    w1, b1, w2, b2, w3, b3 = params
    return (w1.astype(jnp.bfloat16),
            b1.reshape(1, H1).astype(jnp.float32),
            w2.astype(jnp.bfloat16),
            b2.reshape(1, H2).astype(jnp.float32),
            w3.reshape(1, H2).astype(jnp.float32),
            b3.reshape(1, 1).astype(jnp.float32))


def discriminator_forward(x_nchw, prepared_params, *, tm=1024):
    """x_nchw: (B, 1, 28, 28) float32.  Returns (B, 1) float32."""
    w1, b1, w2, b2, w3, b3 = prepared_params
    B = x_nchw.shape[0]

    # nn.Flatten(start_dim=1): metadata-only reshape, stays f32 — no extra
    # HBM pass before the kernel.
    x = x_nchw.reshape(B, K_IN)

    # Batch tile: large (default 1024) to amortize per-grid-step overhead.
    # Shrinks to the 8-rounded batch for small B; capped near B/2 so the
    # parallel batch axis has >= 2 grid steps (both TensorCores used on v7x).
    TM = min(tm, _round_up(B, 8))
    if B > 8:
        TM = min(TM, _round_up(pl.cdiv(B, 2), 8))
    num_tiles = pl.cdiv(B, TM)
    # Ragged last block when B % TM != 0: Pallas clamps the OOB rows of the
    # input tile; the resulting garbage rows are row-local and fall outside
    # the (B, 1) output, so they are never written back.

    const = lambda i: (0, 0)  # weights/biases resident across all batch tiles

    out = pl.pallas_call(
        discriminator_kernel,
        out_shape=jax.ShapeDtypeStruct((B, 1), jnp.float32),
        grid=(num_tiles,),
        in_specs=[
            pl.BlockSpec((TM, K_IN), lambda i: (i, 0)),             # x f32 tile
            pl.BlockSpec((K_IN, H1), const),                        # w1 bf16
            pl.BlockSpec((1, H1), const),                           # b1 f32
            pl.BlockSpec((H1, H2), const),                          # w2 bf16
            pl.BlockSpec((1, H2), const),                           # b2 f32
            pl.BlockSpec((1, H2), const),                           # w3 row f32
            pl.BlockSpec(memory_space=pltpu.MemorySpace.SMEM),      # b3 scalar
        ],
        out_specs=pl.BlockSpec((TM, 1), lambda i: (i, 0)),
        compiler_params=pltpu.CompilerParams(
            dimension_semantics=("parallel",),
            vmem_limit_bytes=32 * 1024 * 1024,
        ),
    )(x, w1, b1, w2, b2, w3, b3)

    return out


def init_params(key):
    """PyTorch-nn.Linear-style init; weights stored as (in, out) = W.T."""
    k1, k2, k3, k4, k5, k6 = jax.random.split(key, 6)

    def lin(kw, kb, fan_in, fan_out):
        bound = 1.0 / jnp.sqrt(jnp.float32(fan_in))
        w = jax.random.uniform(kw, (fan_in, fan_out), jnp.float32,
                               minval=-bound, maxval=bound)
        b = jax.random.uniform(kb, (1, fan_out), jnp.float32,
                               minval=-bound, maxval=bound)
        return w, b

    w1, b1 = lin(k1, k2, K_IN, H1)
    w2, b2 = lin(k3, k4, H1, H2)
    w3, b3 = lin(k5, k6, H2, 1)
    return (w1, b1, w2, b2, w3, b3)


def reference_forward_f32(x_nchw, params):
    """Pure-f32 JAX reference of the PyTorch forward."""
    w1, b1, w2, b2, w3, b3 = params
    x = x_nchw.reshape(x_nchw.shape[0], -1)
    h = _leaky_relu(x @ w1 + b1)
    h = _leaky_relu(h @ w2 + b2)
    return jax.nn.sigmoid(h @ w3 + b3)


def reference_forward_matched(x_nchw, params):
    """Reference mimicking the kernel's precision (bf16 matmul, f32 acc)."""
    w1, b1, w2, b2, w3, b3 = params
    x = x_nchw.reshape(x_nchw.shape[0], -1).astype(jnp.bfloat16)
    h = jnp.dot(x, w1.astype(jnp.bfloat16),
                preferred_element_type=jnp.float32)
    h = _leaky_relu(h + b1)
    h = jnp.dot(h.astype(jnp.bfloat16), w2.astype(jnp.bfloat16),
                preferred_element_type=jnp.float32)
    h = _leaky_relu(h + b2)
    logit = jnp.sum(h * w3.reshape(1, H2), axis=-1, keepdims=True) + b3[0, 0]
    return jax.nn.sigmoid(logit)


if __name__ == "__main__":
    key = jax.random.PRNGKey(0)
    k_params, k_x = jax.random.split(key)

    params = init_params(k_params)
    prepared = prepare_params(params)

    x = jax.random.normal(k_x, (8, 1, 28, 28), dtype=jnp.float32)  # NCHW

    out = discriminator_forward(x, prepared)
    out = jax.block_until_ready(out)

    assert out.shape == (8, 1)

    ref_matched = reference_forward_matched(x, params)
    ref_f32 = reference_forward_f32(x, params)

    assert bool(jnp.allclose(out, ref_matched, atol=1e-3, rtol=1e-3)), \
        "mismatch vs precision-matched reference"
    assert bool(jnp.allclose(out, ref_f32, atol=5e-2, rtol=5e-2)), \
        "mismatch vs f32 reference"

    print("KERNEL_OK")
</pallas_src>

<mosaic_0001>
module attributes {stable_mosaic.version = 11 : i64} {
  func.func @discriminator_kernel(%arg0: i32, %arg1: memref<8x784xf32, #tpu.memory_space<vmem>>, %arg2: memref<784x512xbf16, #tpu.memory_space<vmem>>, %arg3: memref<1x512xf32, #tpu.memory_space<vmem>>, %arg4: memref<512x256xbf16, #tpu.memory_space<vmem>>, %arg5: memref<1x256xf32, #tpu.memory_space<vmem>>, %arg6: memref<1x256xf32, #tpu.memory_space<vmem>>, %arg7: memref<1x1xf32, #tpu.memory_space<smem>>, %arg8: memref<8x1xf32, #tpu.memory_space<vmem>>) attributes {dimension_semantics = [#tpu.dimension_semantics<parallel>], iteration_bounds = array<i64: 1>, scalar_prefetch = 0 : i64, scratch_operands = 0 : i64, tpu.core_type = #tpu.core_type<tc>, window_params = [{transform_indices = @transform_0, window_bounds = array<i64: 8, 784>}, {pipeline_mode = #tpu.pipeline_mode<synchronous>, transform_indices = @transform_1, window_bounds = array<i64: 784, 512>}, {pipeline_mode = #tpu.pipeline_mode<synchronous>, transform_indices = @transform_2, window_bounds = array<i64: 1, 512>}, {pipeline_mode = #tpu.pipeline_mode<synchronous>, transform_indices = @transform_3, window_bounds = array<i64: 512, 256>}, {pipeline_mode = #tpu.pipeline_mode<synchronous>, transform_indices = @transform_4, window_bounds = array<i64: 1, 256>}, {pipeline_mode = #tpu.pipeline_mode<synchronous>, transform_indices = @transform_5, window_bounds = array<i64: 1, 256>}, {transform_indices = @transform_6, window_bounds = array<i64: 1, 1>}, {transform_indices = @transform_7, window_bounds = array<i64: 8, 1>}]} {
    %c0 = arith.constant 0 : index
    %c0_0 = arith.constant 0 : index
    %0 = vector.load %arg1[%c0, %c0_0] : memref<8x784xf32, #tpu.memory_space<vmem>>, vector<8x784xf32>
    %1 = arith.truncf %0 : vector<8x784xf32> to vector<8x784xbf16>
    %c0_1 = arith.constant 0 : index
    %c0_2 = arith.constant 0 : index
    %2 = vector.load %arg2[%c0_1, %c0_2] : memref<784x512xbf16, #tpu.memory_space<vmem>>, vector<784x512xbf16>
    %cst = arith.constant dense<0.000000e+00> : vector<8x512xf32>
    %3 = tpu.matmul %1, %2, %cst {dimension_numbers = #tpu.dot_dimension_numbers<[1], [0], [0], [1], [0, 0, 1, 1], [], []>} : vector<8x784xbf16>, vector<784x512xbf16>, vector<8x512xf32> -> vector<8x512xf32>
    %c0_3 = arith.constant 0 : index
    %c0_4 = arith.constant 0 : index
    %4 = vector.load %arg3[%c0_3, %c0_4] : memref<1x512xf32, #tpu.memory_space<vmem>>, vector<1x512xf32>
    %5 = vector.broadcast %4 : vector<1x512xf32> to vector<8x512xf32>
    %6 = arith.addf %3, %5 : vector<8x512xf32>
    %cst_5 = arith.constant 0.000000e+00 : f32
    %7 = vector.broadcast %cst_5 : f32 to vector<8x512xf32>
    %8 = arith.cmpf ogt, %6, %7 : vector<8x512xf32>
    %cst_6 = arith.constant 0.00999999977 : f32
    %9 = vector.broadcast %cst_6 : f32 to vector<8x512xf32>
    %10 = arith.mulf %9, %6 : vector<8x512xf32>
    %11 = arith.select %8, %6, %10 : vector<8x512xi1>, vector<8x512xf32>
    %12 = arith.truncf %11 : vector<8x512xf32> to vector<8x512xbf16>
    %c0_7 = arith.constant 0 : index
    %c0_8 = arith.constant 0 : index
    %13 = vector.load %arg4[%c0_7, %c0_8] : memref<512x256xbf16, #tpu.memory_space<vmem>>, vector<512x256xbf16>
    %cst_9 = arith.constant dense<0.000000e+00> : vector<8x256xf32>
    %14 = tpu.matmul %12, %13, %cst_9 {dimension_numbers = #tpu.dot_dimension_numbers<[1], [0], [0], [1], [0, 0, 1, 1], [], []>} : vector<8x512xbf16>, vector<512x256xbf16>, vector<8x256xf32> -> vector<8x256xf32>
    %c0_10 = arith.constant 0 : index
    %c0_11 = arith.constant 0 : index
    %15 = vector.load %arg5[%c0_10, %c0_11] : memref<1x256xf32, #tpu.memory_space<vmem>>, vector<1x256xf32>
    %16 = vector.broadcast %15 : vector<1x256xf32> to vector<8x256xf32>
    %17 = arith.addf %14, %16 : vector<8x256xf32>
    %cst_12 = arith.constant 0.000000e+00 : f32
    %18 = vector.broadcast %cst_12 : f32 to vector<8x256xf32>
    %19 = arith.cmpf ogt, %17, %18 : vector<8x256xf32>
    %cst_13 = arith.constant 0.00999999977 : f32
    %20 = vector.broadcast %cst_13 : f32 to vector<8x256xf32>
    %21 = arith.mulf %20, %17 : vector<8x256xf32>
    %22 = arith.select %19, %17, %21 : vector<8x256xi1>, vector<8x256xf32>
    %c0_14 = arith.constant 0 : index
    %c0_15 = arith.constant 0 : index
    %23 = vector.load %arg6[%c0_14, %c0_15] : memref<1x256xf32, #tpu.memory_space<vmem>>, vector<1x256xf32>
    %24 = vector.broadcast %23 : vector<1x256xf32> to vector<8x256xf32>
    %25 = arith.mulf %22, %24 : vector<8x256xf32>
    %cst_16 = arith.constant dense<0.000000e+00> : vector<8xf32>
    %26 = vector.multi_reduction <add>, %25, %cst_16 [1] : vector<8x256xf32> to vector<8xf32>
    %27 = vector.shape_cast %26 : vector<8xf32> to vector<8x1xf32>
    %c0_17 = arith.constant 0 : index
    %c0_18 = arith.constant 0 : index
    %28 = memref.load %arg7[%c0_17, %c0_18] : memref<1x1xf32, #tpu.memory_space<smem>>
    %29 = vector.broadcast %28 : f32 to vector<8x1xf32>
    %30 = arith.addf %27, %29 : vector<8x1xf32>
    %31 = arith.negf %30 : vector<8x1xf32>
    %32 = math.exp %31 : vector<8x1xf32>
    %cst_19 = arith.constant 1.000000e+00 : f32
    %33 = vector.broadcast %cst_19 : f32 to vector<8x1xf32>
    %34 = arith.addf %33, %32 : vector<8x1xf32>
    %35 = arith.divf %33, %34 : vector<8x1xf32>
    %c0_20 = arith.constant 0 : index
    %c0_21 = arith.constant 0 : index
    %36 = vector.load %arg8[%c0_20, %c0_21] : memref<8x1xf32, #tpu.memory_space<vmem>>, vector<8x1xf32>
    tpu.vector_store %arg8[%c0_20, %c0_21], %35 {strides = array<i32>} : memref<8x1xf32, #tpu.memory_space<vmem>>, vector<8x1xf32>,
    return
  }
  func.func @transform_0(%arg0: i32) -> (i32, i32) {
    %c0_i32 = arith.constant 0 : i32
    %c0_i32_0 = arith.constant 0 : i32
    return %arg0, %c0_i32 : i32, i32
  }
  func.func @transform_1(%arg0: i32) -> (i32, i32) {
    %c0_i32 = arith.constant 0 : i32
    %c0_i32_0 = arith.constant 0 : i32
    %c0_i32_1 = arith.constant 0 : i32
    return %c0_i32, %c0_i32_0 : i32, i32
  }
  func.func @transform_2(%arg0: i32) -> (i32, i32) {
    %c0_i32 = arith.constant 0 : i32
    %c0_i32_0 = arith.constant 0 : i32
    %c0_i32_1 = arith.constant 0 : i32
    return %c0_i32, %c0_i32_0 : i32, i32
  }
  func.func @transform_3(%arg0: i32) -> (i32, i32) {
    %c0_i32 = arith.constant 0 : i32
    %c0_i32_0 = arith.constant 0 : i32
    %c0_i32_1 = arith.constant 0 : i32
    return %c0_i32, %c0_i32_0 : i32, i32
  }
  func.func @transform_4(%arg0: i32) -> (i32, i32) {
    %c0_i32 = arith.constant 0 : i32
    %c0_i32_0 = arith.constant 0 : i32
    %c0_i32_1 = arith.constant 0 : i32
    return %c0_i32, %c0_i32_0 : i32, i32
  }
  func.func @transform_5(%arg0: i32) -> (i32, i32) {
    %c0_i32 = arith.constant 0 : i32
    %c0_i32_0 = arith.constant 0 : i32
    %c0_i32_1 = arith.constant 0 : i32
    return %c0_i32, %c0_i32_0 : i32, i32
  }
  func.func @transform_6(%arg0: i32) -> (i32, i32) {
    %c0_i32 = arith.constant 0 : i32
    %c0_i32_0 = arith.constant 0 : i32
    %c0_i32_1 = arith.constant 0 : i32
    return %c0_i32, %c0_i32_0 : i32, i32
  }
  func.func @transform_7(%arg0: i32) -> (i32, i32) {
    %c0_i32 = arith.constant 0 : i32
    %c0_i32_0 = arith.constant 0 : i32
    return %arg0, %c0_i32 : i32, i32
  }
}

</mosaic_0001>

<bundles_post_ra>
// kernel: tpu_custom_call.1
= control target key start
LH: loop header
LB: loop body
LE: loop exit
PB: predicated region body
PF: predicated region fallthrough
CT: control target
= control target key end

     0   :  { %13 = vsyncpa [#allocation4], 0  ;;  %s3065_s0 = inlined_call_operand.hbm [shape: f32[8,784], index: 0, kind: input, shape index: {}]   ;;  %s3066_s1 = inlined_call_operand.hbm [shape: bf16[784,512], index: 1, kind: input, shape index: {}]   ;;  %s3067_s2 = inlined_call_operand.vmem [shape: f32[1,512], index: 2, kind: input, shape index: {}]   ;;  %s3068_s3 = inlined_call_operand.hbm [shape: bf16[512,256], index: 3, kind: input, shape index: {}]   ;;  %s3069_s4 = inlined_call_operand.vmem [shape: f32[1,256], index: 4, kind: input, shape index: {}]   ;;  %s3070_s5 = inlined_call_operand.vmem [shape: f32[1,256], index: 5, kind: input, shape index: {}]   ;;  %s3071_s6 = inlined_call_operand.<no memory space> [shape: f32[1,1], index: 6, kind: input, shape index: {}]   ;;  %s3072_s7 = inlined_call_operand.vmem [shape: f32[8,1], index: 7, kind: output, shape index: {}]  }
   0x1   :  { %14 = vsyncpa [#allocation6], 0  ;;  %s2912_s24 = smov [#allocation5]   ;;  %s2842_s28 = scalar_lea.hbm %s3066_s1, 25088 }
   0x2   :  { %s30_s25 = sshll.u32 %s2912_s24, 4  ;;  %p2843_p0 = scmp.ne.s32.totalorder %s3066_s1, %s2842_s28  ;;  %s31_s25 = int_to_ptr.vmem [resolvable:$true] %s30_s25 }
   0x3   :  { %p2846_p1 = scmp.lt.u32.totalorder %s2842_s28, %s3066_s1 }
   0x5   :  { %p2848_p2 = pnand %p2846_p1, %p2843_p0 }
   0x7   :  { %2851 = shalt.err (!%p2848_p2)
}
   0x8   :  { %s2852_s10 = scalar_lea.vmem %s31_s25, 25088  ;;  %p2857_p4 = scmp.lt.s32.totalorder %s31_s25, %s31_s25 }
   0x9   :  { %p2853_p3 = scmp.ne.s32.totalorder %s31_s25, %s2852_s10  ;;  %p2858_p5 = scmp.lt.s32.totalorder %s2852_s10, %s2852_s10 }
   0xb   :  { %p2859_p6 = por %p2858_p5, %p2857_p4 }
   0xd   :  { %p2860_p7 = pnand %p2859_p6, %p2853_p3 }
   0xf   :  { %2863 = shalt.err (!%p2860_p7)
}
  0x10   :  { %s2913_s11 = smov 256   ;;  %s2914_s12 = smov 16  }
  0x11   :  { %36 = dma.hbm_to_vmem [thread:$0]  %s3066_s1, 25088, %s31_s25, [#allocation6], %s2913_s11, %s2913_s11, %s2914_s12  }
  0x12   :  { %s2915_s15 = smov [#allocation3]   ;;  %s2916_s17 = smov [#allocation7]  }
  0x13   :  { %s21_s16 = sshll.u32 %s2915_s15, 4  ;;  %s44_s18 = sshll.u32 %s2916_s17, 4  ;;  %s22_s16 = int_to_ptr.vmem [resolvable:$true] %s21_s16  ;;  %s45_s18 = int_to_ptr.vmem [resolvable:$true] %s44_s18 }
  0x14   :  { %s2864_s21 = scalar_lea.hbm %s3065_s0, 896 }
  0x15   :  { %p2865_p8 = scmp.ne.s32.totalorder %s3065_s0, %s2864_s21  ;;  %p2868_p9 = scmp.lt.u32.totalorder %s2864_s21, %s3065_s0 }
  0x17   :  { %p2870_p10 = pnand %p2868_p9, %p2865_p8 }
  0x19   :  { %2873 = shalt.err (!%p2870_p10)
}
  0x1a   :  { %s2874_s1 = scalar_lea.vmem %s22_s16, 896  ;;  %p2879_p12 = scmp.lt.s32.totalorder %s22_s16, %s22_s16 }
  0x1b   :  { %p2875_p11 = scmp.ne.s32.totalorder %s22_s16, %s2874_s1  ;;  %p2880_p13 = scmp.lt.s32.totalorder %s2874_s1, %s2874_s1 }
  0x1d   :  { %p2881_p0 = por %p2880_p13, %p2879_p12 }
  0x1f   :  { %p2882_p1 = pnand %p2881_p0, %p2875_p11 }
  0x21   :  { %2885 = shalt.err (!%p2882_p1)
}
  0x22   :  { %24 = dma.hbm_to_vmem [thread:$0]  %s3065_s0, 896, %s22_s16, [#allocation4]  }
  0x23   :  { %s2886_s30 = scalar_lea.hbm %s3068_s3, 8192 }
  0x24   :  { %p2887_p2 = scmp.ne.s32.totalorder %s3068_s3, %s2886_s30  ;;  %p2890_p3 = scmp.lt.u32.totalorder %s2886_s30, %s3068_s3 }
  0x26   :  { %p2892_p4 = pnand %p2890_p3, %p2887_p2 }
  0x28   :  { %2895 = shalt.err (!%p2892_p4)
}
  0x29   :  { %s2896_s12 = scalar_lea.vmem %s45_s18, 8192  ;;  %p2901_p6 = scmp.lt.s32.totalorder %s45_s18, %s45_s18 }
  0x2a   :  { %p2897_p5 = scmp.ne.s32.totalorder %s45_s18, %s2896_s12  ;;  %p2902_p7 = scmp.lt.s32.totalorder %s2896_s12, %s2896_s12 }
  0x2c   :  { %p2903_p8 = por %p2902_p7, %p2901_p6 }
  0x2e   :  { %p2904_p9 = pnand %p2903_p8, %p2897_p5 }
  0x30   :  { %2907 = shalt.err (!%p2904_p9)
}
  0x31   :  { %s2917_s0 = smov 128   ;;  %s2918_s13 = smov 8  }
  0x32   :  { %50 = dma.hbm_to_vmem [thread:$0]  %s3068_s3, 8192, %s45_s18, [#allocation6], %s2917_s0, %s2917_s0, %s2918_s13  }
  0x33   :  { %2908 = dma.done.wait [#allocation4], 896  }
  0x34   :  { %2909 = vsyncadd [#allocation4], 4294966400 }
  0x35   :  { %2910 = dma.done.wait [#allocation6], 33280  }
  0x36   :  { %2911 = vsyncadd [#allocation6], 4294934016  ;;  %v2448_v0 = vld [vmem:[#allocation5 + $0x4] ss:$16 sps:$4 sm:$0xff]   ;;  %v2452_v2 = vld [vmem:[#allocation5] ss:$16 sps:$4 sm:$0xff]  }
  0x37   :  { %v2450_v1 = vld [vmem:[#allocation5 + $0x204] ss:$16 sps:$4 sm:$0xff]   ;;  %1283 = vmatprep.subr.bf16.mxu1 %v2448_v0  ;;  %v2453_v3 = vld [vmem:[#allocation5 + $0x200] ss:$16 sps:$4 sm:$0xff]   ;;  %vm1279_vm0 = vcmask 130048   ;;  %vm2137_vm7 = vcmask 7168  }
  0x38   :  { %1324 = vmatprep.subr.bf16.mxu0 %v2450_v1  ;;  %v2454_v4 = vld [vmem:[#allocation5 + $0x24] ss:$16 sps:$4 sm:$0xff]   ;;  %1284 = vmatpush1.bf16.msra.mxu1 %v2452_v2  ;;  %v2458_v6 = vld [vmem:[#allocation5 + $0x20] ss:$16 sps:$4 sm:$0xff]  }
  0x39   :  { %1325 = vmatpush1.bf16.msra.mxu0 %v2453_v3  ;;  %v2456_v5 = vld [vmem:[#allocation5 + $0x224] ss:$16 sps:$4 sm:$0xff]   ;;  %1285 = vmatprep.subr.bf16.mxu1 %v2454_v4  ;;  %v2459_v7 = vld [vmem:[#allocation5 + $0x220] ss:$16 sps:$4 sm:$0xff]   ;;  %v67_v4 = vld [vmem:[#allocation3] sm:$0xff] }
  0x3a   :  { %1326 = vmatprep.subr.bf16.mxu0 %v2456_v5  ;;  %v2460_v8 = vld [vmem:[#allocation5 + $0x44] ss:$16 sps:$4 sm:$0xff]   ;;  %v2464_v10 = vld [vmem:[#allocation5 + $0x40] ss:$16 sps:$4 sm:$0xff]  }
  0x3b   :  { %v2462_v9 = vld [vmem:[#allocation5 + $0x244] ss:$16 sps:$4 sm:$0xff]   ;;  %v2465_v11 = vld [vmem:[#allocation5 + $0x240] ss:$16 sps:$4 sm:$0xff]  }
  0x3c   :  { %1286 = vmatpush1.bf16.msra.mxu1 %v2458_v6  ;;  %v2466_v12 = vld [vmem:[#allocation5 + $0x64] ss:$16 sps:$4 sm:$0xff]   ;;  %v2470_v14 = vld [vmem:[#allocation5 + $0x60] ss:$16 sps:$4 sm:$0xff]   ;;  %v69_v6 = vld [vmem:[#allocation3 + $0x10] sm:$0xff] }
  0x3d   :  { %1327 = vmatpush1.bf16.msra.mxu0 %v2459_v7  ;;  %1287 = vmatprep.subr.bf16.mxu1 %v2460_v8  ;;  %v2468_v13 = vld [vmem:[#allocation5 + $0x264] ss:$16 sps:$4 sm:$0xff]   ;;  %v2471_v15 = vld [vmem:[#allocation5 + $0x260] ss:$16 sps:$4 sm:$0xff]   ;;  %v2549_v7 = vld [vmem:[#allocation5 + $0xc] ss:$16 sps:$4 sm:$0xff]   ;;  %v3002_v8 = vpack.c.bf16 %v67_v4, %v67_v4 }
  0x3e   :  { %1328 = vmatprep.subr.bf16.mxu0 %v2462_v9  ;;  %v2472_v16 = vld [vmem:[#allocation5 + $0x84] ss:$16 sps:$4 sm:$0xff]   ;;  %v2476_v18 = vld [vmem:[#allocation5 + $0x80] ss:$16 sps:$4 sm:$0xff]   ;;  %v2633_v4 = vld [vmem:[#allocation5 + $0x1cc] ss:$16 sps:$4 sm:$0xff]  }
  0x3f   :  { %v2474_v17 = vld [vmem:[#allocation5 + $0x284] ss:$16 sps:$4 sm:$0xff]   ;;  %v2477_v19 = vld [vmem:[#allocation5 + $0x280] ss:$16 sps:$4 sm:$0xff]  }
  0x40   :  { %1288 = vmatpush1.bf16.msra.mxu1 %v2464_v10  ;;  %v2478_v20 = vld [vmem:[#allocation5 + $0xa4] ss:$16 sps:$4 sm:$0xff]   ;;  %v2482_v22 = vld [vmem:[#allocation5 + $0xa0] ss:$16 sps:$4 sm:$0xff]   ;;  %v2547_v10 = vld [vmem:[#allocation5 + $0x8] ss:$16 sps:$4 sm:$0xff]  }
  0x41   :  { %1329 = vmatpush1.bf16.msra.mxu0 %v2465_v11  ;;  %1289 = vmatprep.subr.bf16.mxu1 %v2466_v12  ;;  %v2480_v21 = vld [vmem:[#allocation5 + $0x2a4] ss:$16 sps:$4 sm:$0xff]   ;;  %v2483_v23 = vld [vmem:[#allocation5 + $0x2a0] ss:$16 sps:$4 sm:$0xff]   ;;  %v3004_v11 = vpack.c.bf16 %v69_v6, %v69_v6  ;;  %v2631_v6 = vld [vmem:[#allocation5 + $0x1c8] ss:$16 sps:$4 sm:$0xff]  }
  0x42   :  { %1330 = vmatprep.subr.bf16.mxu0 %v2468_v13  ;;  %v2484_v24 = vld [vmem:[#allocation5 + $0xc4] ss:$16 sps:$4 sm:$0xff]   ;;  %v2488_v26 = vld [vmem:[#allocation5 + $0xc0] ss:$16 sps:$4 sm:$0xff]   ;;  %v2555_v13 = vld [vmem:[#allocation5 + $0x2c] ss:$16 sps:$4 sm:$0xff]  }
  0x43   :  { %v2486_v25 = vld [vmem:[#allocation5 + $0x2c4] ss:$16 sps:$4 sm:$0xff]   ;;  %v2489_v27 = vld [vmem:[#allocation5 + $0x2c0] ss:$16 sps:$4 sm:$0xff]  }
  0x44   :  { %1290 = vmatpush1.bf16.msra.mxu1 %v2470_v14  ;;  %v2490_v28 = vld [vmem:[#allocation5 + $0xe4] ss:$16 sps:$4 sm:$0xff]   ;;  %v2494_v30 = vld [vmem:[#allocation5 + $0xe0] ss:$16 sps:$4 sm:$0xff]  }
  0x45   :  { %1331 = vmatpush1.bf16.msra.mxu0 %v2471_v15  ;;  %1291 = vmatprep.subr.bf16.mxu1 %v2472_v16  ;;  %v2492_v29 = vld [vmem:[#allocation5 + $0x2e4] ss:$16 sps:$4 sm:$0xff]   ;;  %v2495_v31 = vld [vmem:[#allocation5 + $0x2e0] ss:$16 sps:$4 sm:$0xff]   ;;  %v2553_v15 = vld [vmem:[#allocation5 + $0x28] ss:$16 sps:$4 sm:$0xff]  }
  0x46   :  { %1332 = vmatprep.subr.bf16.mxu0 %v2474_v17  ;;  %v2496_v32 = vld [vmem:[#allocation5 + $0x104] ss:$16 sps:$4 sm:$0xff]   ;;  %v2500_v34 = vld [vmem:[#allocation5 + $0x100] ss:$16 sps:$4 sm:$0xff]   ;;  %v2561_v17 = vld [vmem:[#allocation5 + $0x4c] ss:$16 sps:$4 sm:$0xff]  }
  0x47   :  { %v2498_v33 = vld [vmem:[#allocation5 + $0x304] ss:$16 sps:$4 sm:$0xff]   ;;  %v2501_v35 = vld [vmem:[#allocation5 + $0x300] ss:$16 sps:$4 sm:$0xff]  }
  0x48   :  { %1292 = vmatpush1.bf16.msra.mxu1 %v2476_v18  ;;  %v2502_v36 = vld [vmem:[#allocation5 + $0x124] ss:$16 sps:$4 sm:$0xff]   ;;  %v2506_v38 = vld [vmem:[#allocation5 + $0x120] ss:$16 sps:$4 sm:$0xff]  }
  0x49   :  { %1333 = vmatpush1.bf16.msra.mxu0 %v2477_v19  ;;  %1293 = vmatprep.subr.bf16.mxu1 %v2478_v20  ;;  %v2504_v37 = vld [vmem:[#allocation5 + $0x324] ss:$16 sps:$4 sm:$0xff]   ;;  %v2507_v39 = vld [vmem:[#allocation5 + $0x320] ss:$16 sps:$4 sm:$0xff]   ;;  %v2559_v19 = vld [vmem:[#allocation5 + $0x48] ss:$16 sps:$4 sm:$0xff]  }
  0x4a   :  { %1334 = vmatprep.subr.bf16.mxu0 %v2480_v21  ;;  %v2508_v40 = vld [vmem:[#allocation5 + $0x144] ss:$16 sps:$4 sm:$0xff]   ;;  %v2512_v42 = vld [vmem:[#allocation5 + $0x140] ss:$16 sps:$4 sm:$0xff]   ;;  %v2567_v21 = vld [vmem:[#allocation5 + $0x6c] ss:$16 sps:$4 sm:$0xff]  }
  0x4b   :  { %v2510_v41 = vld [vmem:[#allocation5 + $0x344] ss:$16 sps:$4 sm:$0xff]   ;;  %v2513_v43 = vld [vmem:[#allocation5 + $0x340] ss:$16 sps:$4 sm:$0xff]  }
  0x4c   :  { %1294 = vmatpush1.bf16.msra.mxu1 %v2482_v22  ;;  %v2514_v44 = vld [vmem:[#allocation5 + $0x164] ss:$16 sps:$4 sm:$0xff]   ;;  %v2518_v47 = vld [vmem:[#allocation5 + $0x160] ss:$16 sps:$4 sm:$0xff]  }
  0x4d   :  { %1335 = vmatpush1.bf16.msra.mxu0 %v2483_v23  ;;  %1295 = vmatprep.subr.bf16.mxu1 %v2484_v24  ;;  %v2516_v45 = vld [vmem:[#allocation5 + $0x364] ss:$16 sps:$4 sm:$0xff]   ;;  %v2519_v50 = vld [vmem:[#allocation5 + $0x360] ss:$16 sps:$4 sm:$0xff]   ;;  %v2565_v23 = vld [vmem:[#allocation5 + $0x68] ss:$16 sps:$4 sm:$0xff]  }
  0x4e   :  { %1336 = vmatprep.subr.bf16.mxu0 %v2486_v25  ;;  %v68_v46 = vld [vmem:[#allocation3 + $0x8] sm:$0xff]  ;;  %v70_v49 = vld [vmem:[#allocation3 + $0x18] sm:$0xff]  ;;  %v2573_v25 = vld [vmem:[#allocation5 + $0x8c] ss:$16 sps:$4 sm:$0xff]  }
  0x4f   :  { %v2996_v48 = vpack.c.bf16 %v68_v46, %v68_v46  ;;  %v2520_v51 = vld [vmem:[#allocation5 + $0x184] ss:$16 sps:$4 sm:$0xff]   ;;  %v2998_v52 = vpack.c.bf16 %v70_v49, %v70_v49  ;;  %v2524_v54 = vld [vmem:[#allocation5 + $0x180] ss:$16 sps:$4 sm:$0xff]   ;;  %v2601_v49 = vld [vmem:[#allocation5 + $0x128] ss:$16 sps:$4 sm:$0xff]  }
  0x50   :  { %1296 = vmatpush1.bf16.msra.mxu1 %v2488_v26  ;;  %v2522_v53 = vld [vmem:[#allocation5 + $0x384] ss:$16 sps:$4 sm:$0xff]   ;;  %v2525_v55 = vld [vmem:[#allocation5 + $0x380] ss:$16 sps:$4 sm:$0xff]  }
  0x51   :  { %1337 = vmatpush1.bf16.msra.mxu0 %v2489_v27  ;;  %1297 = vmatprep.subr.bf16.mxu1 %v2490_v28  ;;  %v2526_v56 = vld [vmem:[#allocation5 + $0x1a4] ss:$16 sps:$4 sm:$0xff]   ;;  %v2530_v58 = vld [vmem:[#allocation5 + $0x1a0] ss:$16 sps:$4 sm:$0xff]   ;;  %v2571_v27 = vld [vmem:[#allocation5 + $0x88] ss:$16 sps:$4 sm:$0xff]  }
  0x52   :  { %1338 = vmatprep.subr.bf16.mxu0 %v2492_v29  ;;  %1315 = vmatprep.mubr.bf16.mxu1 %v2996_v48  ;;  %v2528_v57 = vld [vmem:[#allocation5 + $0x3a4] ss:$16 sps:$4 sm:$0xff]   ;;  %v2531_v59 = vld [vmem:[#allocation5 + $0x3a0] ss:$16 sps:$4 sm:$0xff]   ;;  %v2579_v29 = vld [vmem:[#allocation5 + $0xac] ss:$16 sps:$4 sm:$0xff]  }
  0x53   :  { %1356 = vmatprep.mubr.bf16.mxu0 %v2998_v52  ;;  %v2532_v60 = vld [vmem:[#allocation5 + $0x1c4] ss:$16 sps:$4 sm:$0xff]   ;;  %v2536_v62 = vld [vmem:[#allocation5 + $0x1c0] ss:$16 sps:$4 sm:$0xff]  }
  0x54   :  { %1298 = vmatpush1.bf16.msra.mxu1 %v2494_v30  ;;  %v2534_v61 = vld [vmem:[#allocation5 + $0x3c4] ss:$16 sps:$4 sm:$0xff]   ;;  %v2537_v63 = vld [vmem:[#allocation5 + $0x3c0] ss:$16 sps:$4 sm:$0xff]  }
  0x55   :  { %1339 = vmatpush1.bf16.msra.mxu0 %v2495_v31  ;;  %1299 = vmatprep.subr.bf16.mxu1 %v2496_v32  ;;  %v2538_v0 = vld [vmem:[#allocation5 + $0x1e4] ss:$16 sps:$4 sm:$0xff]   ;;  %v2542_v2 = vld [vmem:[#allocation5 + $0x1e0] ss:$16 sps:$4 sm:$0xff]   ;;  %v2577_v31 = vld [vmem:[#allocation5 + $0xa8] ss:$16 sps:$4 sm:$0xff]  }
  0x56   :  { %1340 = vmatprep.subr.bf16.mxu0 %v2498_v33  ;;  %v2540_v1 = vld [vmem:[#allocation5 + $0x3e4] ss:$16 sps:$4 sm:$0xff]   ;;  %v2543_v3 = vld [vmem:[#allocation5 + $0x3e0] ss:$16 sps:$4 sm:$0xff]   ;;  %v2585_v33 = vld [vmem:[#allocation5 + $0xcc] ss:$16 sps:$4 sm:$0xff]  }
  0x57   :  { %v2546_v5 = vld [vmem:[#allocation5 + $0x404] ss:$16 sps:$4 sm:$0xff]   ;;  %v2544_v9 = vld [vmem:[#allocation5 + $0x400] ss:$16 sps:$4 sm:$0xff]  }
  0x58   :  { %1300 = vmatpush1.bf16.msra.mxu1 %v2500_v34  ;;  %v2552_v12 = vld [vmem:[#allocation5 + $0x424] ss:$16 sps:$4 sm:$0xff]   ;;  %v2550_v14 = vld [vmem:[#allocation5 + $0x420] ss:$16 sps:$4 sm:$0xff]  }
  0x59   :  { %1341 = vmatpush1.bf16.msra.mxu0 %v2501_v35  ;;  %1301 = vmatprep.subr.bf16.mxu1 %v2502_v36  ;;  %v2558_v16 = vld [vmem:[#allocation5 + $0x444] ss:$16 sps:$4 sm:$0xff]   ;;  %v2556_v18 = vld [vmem:[#allocation5 + $0x440] ss:$16 sps:$4 sm:$0xff]  }
  0x5a   :  { %1342 = vmatprep.subr.bf16.mxu0 %v2504_v37  ;;  %v2564_v20 = vld [vmem:[#allocation5 + $0x464] ss:$16 sps:$4 sm:$0xff]   ;;  %v2562_v22 = vld [vmem:[#allocation5 + $0x460] ss:$16 sps:$4 sm:$0xff]   ;;  %v2583_v37 = vld [vmem:[#allocation5 + $0xc8] ss:$16 sps:$4 sm:$0xff]  }
  0x5b   :  { %v2570_v24 = vld [vmem:[#allocation5 + $0x484] ss:$16 sps:$4 sm:$0xff]   ;;  %v2568_v26 = vld [vmem:[#allocation5 + $0x480] ss:$16 sps:$4 sm:$0xff]  }
  0x5c   :  { %1302 = vmatpush1.bf16.msra.mxu1 %v2506_v38  ;;  %v2576_v28 = vld [vmem:[#allocation5 + $0x4a4] ss:$16 sps:$4 sm:$0xff]   ;;  %v2574_v30 = vld [vmem:[#allocation5 + $0x4a0] ss:$16 sps:$4 sm:$0xff]  }
  0x5d   :  { %1343 = vmatpush1.bf16.msra.mxu0 %v2507_v39  ;;  %1303 = vmatprep.subr.bf16.mxu1 %v2508_v40  ;;  %v2582_v32 = vld [vmem:[#allocation5 + $0x4c4] ss:$16 sps:$4 sm:$0xff]   ;;  %v2580_v36 = vld [vmem:[#allocation5 + $0x4c0] ss:$16 sps:$4 sm:$0xff]   ;;  %v2591_v39 = vld [vmem:[#allocation5 + $0xec] ss:$16 sps:$4 sm:$0xff]  }
  0x5e   :  { %1344 = vmatprep.subr.bf16.mxu0 %v2510_v41  ;;  %v72_v34 = vld [vmem:[#allocation3 + $0x28] sm:$0xff]  ;;  %v2589_v41 = vld [vmem:[#allocation5 + $0xe8] ss:$16 sps:$4 sm:$0xff]  }
  0x5f   :  { %v3009_v35 = vpack.c.bf16 %v72_v34, %v72_v34  ;;  %v2588_v38 = vld [vmem:[#allocation5 + $0x4e4] ss:$16 sps:$4 sm:$0xff]   ;;  %v2586_v40 = vld [vmem:[#allocation5 + $0x4e0] ss:$16 sps:$4 sm:$0xff]  }
  0x60   :  { %1304 = vmatpush1.bf16.msra.mxu1 %v2512_v42  ;;  %v2594_v42 = vld [vmem:[#allocation5 + $0x504] ss:$16 sps:$4 sm:$0xff]  }
  0x61   :  { %1345 = vmatpush1.bf16.msra.mxu0 %v2513_v43  ;;  %1305 = vmatprep.subr.bf16.mxu1 %v2514_v44  ;;  %v2597_v43 = vld [vmem:[#allocation5 + $0x10c] ss:$16 sps:$4 sm:$0xff]   ;;  %v2592_v44 = vld [vmem:[#allocation5 + $0x500] ss:$16 sps:$4 sm:$0xff]   ;;  %v2600_v46 = vld [vmem:[#allocation5 + $0x524] ss:$16 sps:$4 sm:$0xff]  }
  0x62   :  { %1346 = vmatprep.subr.bf16.mxu0 %v2516_v45  ;;  %v2595_v45 = vld [vmem:[#allocation5 + $0x108] ss:$16 sps:$4 sm:$0xff]   ;;  %v2744_v34 = vld [vmem:[#allocation7 + $0x4] ss:$8 sps:$4 sm:$0xff]  }
  0x64   :  { %1306 = vmatpush1.bf16.msra.mxu1 %v2518_v47  ;;  %v2603_v47 = vld [vmem:[#allocation5 + $0x12c] ss:$16 sps:$4 sm:$0xff]  }
  0x65   :  { %1347 = vmatpush1.bf16.msra.mxu0 %v2519_v50  ;;  %1307 = vmatprep.subr.bf16.mxu1 %v2520_v51  ;;  %v2606_v50 = vld [vmem:[#allocation5 + $0x544] ss:$16 sps:$4 sm:$0xff]   ;;  %v2609_v51 = vld [vmem:[#allocation5 + $0x14c] ss:$16 sps:$4 sm:$0xff]  }
  0x66   :  { %1348 = vmatprep.subr.bf16.mxu0 %v2522_v53  ;;  %v2604_v53 = vld [vmem:[#allocation5 + $0x540] ss:$16 sps:$4 sm:$0xff]  }
  0x68   :  { %1308 = vmatpush1.bf16.msra.mxu1 %v2524_v54  ;;  %v2607_v54 = vld [vmem:[#allocation5 + $0x148] ss:$16 sps:$4 sm:$0xff]  }
  0x69   :  { %1349 = vmatpush1.bf16.msra.mxu0 %v2525_v55  ;;  %1309 = vmatprep.subr.bf16.mxu1 %v2526_v56  ;;  %v2612_v55 = vld [vmem:[#allocation5 + $0x564] ss:$16 sps:$4 sm:$0xff]   ;;  %v2615_v56 = vld [vmem:[#allocation5 + $0x16c] ss:$16 sps:$4 sm:$0xff]  }
  0x6a   :  { %1350 = vmatprep.subr.bf16.mxu0 %v2528_v57  ;;  %v2610_v57 = vld [vmem:[#allocation5 + $0x560] ss:$16 sps:$4 sm:$0xff]  }
  0x6c   :  { %1310 = vmatpush1.bf16.msra.mxu1 %v2530_v58  ;;  %v2613_v58 = vld [vmem:[#allocation5 + $0x168] ss:$16 sps:$4 sm:$0xff]  }
  0x6d   :  { %1351 = vmatpush1.bf16.msra.mxu0 %v2531_v59  ;;  %1311 = vmatprep.subr.bf16.mxu1 %v2532_v60  ;;  %v2618_v59 = vld [vmem:[#allocation5 + $0x584] ss:$16 sps:$4 sm:$0xff]   ;;  %v2621_v60 = vld [vmem:[#allocation5 + $0x18c] ss:$16 sps:$4 sm:$0xff]  }
  0x6e   :  { %1352 = vmatprep.subr.bf16.mxu0 %v2534_v61  ;;  %v2616_v61 = vld [vmem:[#allocation5 + $0x580] ss:$16 sps:$4 sm:$0xff]  }
  0x70   :  { %1312 = vmatpush1.bf16.msra.mxu1 %v2536_v62  ;;  %v2619_v62 = vld [vmem:[#allocation5 + $0x188] ss:$16 sps:$4 sm:$0xff]  }
  0x71   :  { %1353 = vmatpush1.bf16.msra.mxu0 %v2537_v63  ;;  %1313 = vmatprep.subr.bf16.mxu1 %v2538_v0  ;;  %v2624_v63 = vld [vmem:[#allocation5 + $0x5a4] ss:$16 sps:$4 sm:$0xff]   ;;  %v2627_v0 = vld [vmem:[#allocation5 + $0x1ac] ss:$16 sps:$4 sm:$0xff]  }
  0x72   :  { %1354 = vmatprep.subr.bf16.mxu0 %v2540_v1  ;;  %v2622_v1 = vld [vmem:[#allocation5 + $0x5a0] ss:$16 sps:$4 sm:$0xff]  }
  0x74   :  { %1314 = vmatpush1.bf16.msra.mxu1 %v2542_v2  ;;  %v2625_v2 = vld [vmem:[#allocation5 + $0x1a8] ss:$16 sps:$4 sm:$0xff]  }
  0x75   :  { %1355 = vmatpush1.bf16.msra.mxu0 %v2543_v3  ;;  %1447 = vmatprep.subr.bf16.mxu1 %v2549_v7  ;;  %v2630_v3 = vld [vmem:[#allocation5 + $0x5c4] ss:$16 sps:$4 sm:$0xff]  }
  0x76   :  { %1365 = vmatprep.subr.bf16.mxu0 %v2546_v5  ;;  %v2628_v5 = vld [vmem:[#allocation5 + $0x5c0] ss:$16 sps:$4 sm:$0xff]   ;;  %v2636_v7 = vld [vmem:[#allocation5 + $0x5e4] ss:$16 sps:$4 sm:$0xff]  }
  0x77   :  { %1316 = vmatmul.mubr.bf16.vlgmr.msra.gmra.mrb[0].mxu1 %v3002_v8 }
  0x78   :  { %1357 = vmatmul.mubr.bf16.vlgmr.msra.gmra.mrb[0].mxu0 %v3004_v11  ;;  %1448 = vmatpush1.bf16.msra.mxu1 %v2547_v10  ;;  %v2634_v10 = vld [vmem:[#allocation5 + $0x5e0] ss:$16 sps:$4 sm:$0xff]  }
  0x79   :  { %1366 = vmatpush1.bf16.msra.mxu0 %v2544_v9  ;;  %1449 = vmatprep.subr.bf16.mxu1 %v2555_v13  ;;  %v2639_v9 = vld [vmem:[#allocation5 + $0x1ec] ss:$16 sps:$4 sm:$0xff]  }
  0x7a   :  { %1367 = vmatprep.subr.bf16.mxu0 %v2552_v12  ;;  %1479 = vmatprep.mubr.bf16.mxu1 %v2996_v48  ;;  %v2598_v48 = vld [vmem:[#allocation5 + $0x520] ss:$16 sps:$4 sm:$0xff]   ;;  %v2637_v12 = vld [vmem:[#allocation5 + $0x1e8] ss:$16 sps:$4 sm:$0xff]  }
  0x7b   :  { %1397 = vmatprep.mubr.bf16.mxu0 %v3009_v35  ;;  %v71_v13 = vld [vmem:[#allocation3 + $0x20] sm:$0xff] }
  0x7c   :  { %1450 = vmatpush1.bf16.msra.mxu1 %v2553_v15  ;;  %v2648_v15 = vld [vmem:[#allocation5 + $0x604] ss:$16 sps:$4 sm:$0xff]  }
  0x7d   :  { %1368 = vmatpush1.bf16.msra.mxu0 %v2550_v14  ;;  %1451 = vmatprep.subr.bf16.mxu1 %v2561_v17  ;;  %v2642_v14 = vld [vmem:[#allocation5 + $0x20c] ss:$16 sps:$4 sm:$0xff]   ;;  %v2640_v17 = vld [vmem:[#allocation5 + $0x208] ss:$16 sps:$4 sm:$0xff]  }
  0x7e   :  { %1369 = vmatprep.subr.bf16.mxu0 %v2558_v16  ;;  %v3012_v16 = vpack.c.bf16 %v71_v13, %v71_v13  ;;  %v2696_v13 = vld [vmem:[#allocation5 + $0x42c] ss:$16 sps:$4 sm:$0xff]  }
  0x80   :  { %1452 = vmatpush1.bf16.msra.mxu1 %v2559_v19  ;;  %v2645_v19 = vld [vmem:[#allocation5 + $0x22c] ss:$16 sps:$4 sm:$0xff]  }
  0x81   :  { %1370 = vmatpush1.bf16.msra.mxu0 %v2556_v18  ;;  %1453 = vmatprep.subr.bf16.mxu1 %v2567_v21  ;;  %v2646_v18 = vld [vmem:[#allocation5 + $0x600] ss:$16 sps:$4 sm:$0xff]   ;;  %v2651_v21 = vld [vmem:[#allocation5 + $0x24c] ss:$16 sps:$4 sm:$0xff]  }
  0x82   :  { %1371 = vmatprep.subr.bf16.mxu0 %v2564_v20  ;;  %v2643_v20 = vld [vmem:[#allocation5 + $0x228] ss:$16 sps:$4 sm:$0xff]  }
  0x84   :  { %1454 = vmatpush1.bf16.msra.mxu1 %v2565_v23  ;;  %v2649_v23 = vld [vmem:[#allocation5 + $0x248] ss:$16 sps:$4 sm:$0xff]  }
  0x85   :  { %1372 = vmatpush1.bf16.msra.mxu0 %v2562_v22  ;;  %1455 = vmatprep.subr.bf16.mxu1 %v2573_v25  ;;  %v2919_v22 = vmov 0   ;;  %v2654_v25 = vld [vmem:[#allocation5 + $0x26c] ss:$16 sps:$4 sm:$0xff]  }
  0x86   :  { %1373 = vmatprep.subr.bf16.mxu0 %v2570_v24  ;;  %v73_v24 = vld [vmem:[#allocation3 + $0x30] sm:$0xff] }
  0x88   :  { %1456 = vmatpush1.bf16.msra.mxu1 %v2571_v27  ;;  %v3018_v27 = vpack.c.bf16 %v73_v24, %v73_v24  ;;  %v2778_v24 = vld [vmem:[#allocation7 + $0xc0] ss:$8 sps:$4 sm:$0xff]  }
  0x89   :  { %1374 = vmatpush1.bf16.msra.mxu0 %v2568_v26  ;;  %1457 = vmatprep.subr.bf16.mxu1 %v2579_v29  ;;  %v2652_v26 = vld [vmem:[#allocation5 + $0x268] ss:$16 sps:$4 sm:$0xff]   ;;  %v2660_v29 = vld [vmem:[#allocation5 + $0x2ac] ss:$16 sps:$4 sm:$0xff]  }
  0x8a   :  { %1375 = vmatprep.subr.bf16.mxu0 %v2576_v28  ;;  %v2657_v28 = vld [vmem:[#allocation5 + $0x28c] ss:$16 sps:$4 sm:$0xff]  }
  0x8c   :  { %1458 = vmatpush1.bf16.msra.mxu1 %v2577_v31  ;;  %v2663_v31 = vld [vmem:[#allocation5 + $0x2cc] ss:$16 sps:$4 sm:$0xff]  }
  0x8d   :  { %1376 = vmatpush1.bf16.msra.mxu0 %v2574_v30  ;;  %1459 = vmatprep.subr.bf16.mxu1 %v2585_v33  ;;  %v2658_v30 = vld [vmem:[#allocation5 + $0x2a8] ss:$16 sps:$4 sm:$0xff]  }
  0x8e   :  { %1377 = vmatprep.subr.bf16.mxu0 %v2582_v32  ;;  %v2666_v32 = vld [vmem:[#allocation5 + $0x2ec] ss:$16 sps:$4 sm:$0xff]   ;;  %v2742_v33 = vld [vmem:[#allocation7] ss:$8 sps:$4 sm:$0xff]  }
  0x90   :  { %1460 = vmatpush1.bf16.msra.mxu1 %v2583_v37  ;;  %v2664_v37 = vld [vmem:[#allocation5 + $0x2e8] ss:$16 sps:$4 sm:$0xff]  }
  0x91   :  { %1378 = vmatpush1.bf16.msra.mxu0 %v2580_v36  ;;  %1461 = vmatprep.subr.bf16.mxu1 %v2591_v39  ;;  %v2747_v36 = vld [vmem:[#allocation7 + $0x14] ss:$8 sps:$4 sm:$0xff]  }
  0x92   :  { %1379 = vmatprep.subr.bf16.mxu0 %v2588_v38  ;;  %v2745_v38 = vld [vmem:[#allocation7 + $0x10] ss:$8 sps:$4 sm:$0xff]   ;;  %v2669_v39 = vld [vmem:[#allocation5 + $0x30c] ss:$16 sps:$4 sm:$0xff]  }
  0x94   :  { %1462 = vmatpush1.bf16.msra.mxu1 %v2589_v41  ;;  %v2667_v41 = vld [vmem:[#allocation5 + $0x308] ss:$16 sps:$4 sm:$0xff]  }
  0x95   :  { %1380 = vmatpush1.bf16.msra.mxu0 %v2586_v40  ;;  %1463 = vmatprep.subr.bf16.mxu1 %v2597_v43  ;;  %v2750_v40 = vld [vmem:[#allocation7 + $0x24] ss:$8 sps:$4 sm:$0xff]  }
  0x96   :  { %1381 = vmatprep.subr.bf16.mxu0 %v2594_v42  ;;  %v2748_v42 = vld [vmem:[#allocation7 + $0x20] ss:$8 sps:$4 sm:$0xff]   ;;  %v2672_v43 = vld [vmem:[#allocation5 + $0x32c] ss:$16 sps:$4 sm:$0xff]  }
  0x98   :  { %1464 = vmatpush1.bf16.msra.mxu1 %v2595_v45  ;;  %v2670_v45 = vld [vmem:[#allocation5 + $0x328] ss:$16 sps:$4 sm:$0xff]  }
  0x99   :  { %1382 = vmatpush1.bf16.msra.mxu0 %v2592_v44  ;;  %1465 = vmatprep.subr.bf16.mxu1 %v2603_v47  ;;  %v2753_v44 = vld [vmem:[#allocation7 + $0x34] ss:$8 sps:$4 sm:$0xff]  }
  0x9a   :  { %1383 = vmatprep.subr.bf16.mxu0 %v2600_v46  ;;  %v2751_v46 = vld [vmem:[#allocation7 + $0x30] ss:$8 sps:$4 sm:$0xff]   ;;  %v2675_v47 = vld [vmem:[#allocation5 + $0x34c] ss:$16 sps:$4 sm:$0xff]  }
  0x9c   :  { %1466 = vmatpush1.bf16.msra.mxu1 %v2601_v49  ;;  %v2673_v49 = vld [vmem:[#allocation5 + $0x348] ss:$16 sps:$4 sm:$0xff]  }
  0x9d   :  { %1384 = vmatpush1.bf16.msra.mxu0 %v2598_v48  ;;  %1467 = vmatprep.subr.bf16.mxu1 %v2609_v51  ;;  %v2756_v48 = vld [vmem:[#allocation7 + $0x44] ss:$8 sps:$4 sm:$0xff]  }
  0x9e   :  { %1385 = vmatprep.subr.bf16.mxu0 %v2606_v50  ;;  %v2754_v50 = vld [vmem:[#allocation7 + $0x40] ss:$8 sps:$4 sm:$0xff]   ;;  %v2678_v51 = vld [vmem:[#allocation5 + $0x36c] ss:$16 sps:$4 sm:$0xff]  }
  0xa0   :  { %1468 = vmatpush1.bf16.msra.mxu1 %v2607_v54  ;;  %v2676_v54 = vld [vmem:[#allocation5 + $0x368] ss:$16 sps:$4 sm:$0xff]  }
  0xa1   :  { %1386 = vmatpush1.bf16.msra.mxu0 %v2604_v53  ;;  %1469 = vmatprep.subr.bf16.mxu1 %v2615_v56  ;;  %v2759_v53 = vld [vmem:[#allocation7 + $0x54] ss:$8 sps:$4 sm:$0xff]  }
  0xa2   :  { %1387 = vmatprep.subr.bf16.mxu0 %v2612_v55  ;;  %v2757_v55 = vld [vmem:[#allocation7 + $0x50] ss:$8 sps:$4 sm:$0xff]   ;;  %v2681_v56 = vld [vmem:[#allocation5 + $0x38c] ss:$16 sps:$4 sm:$0xff]  }
  0xa4   :  { %1470 = vmatpush1.bf16.msra.mxu1 %v2613_v58  ;;  %v2679_v58 = vld [vmem:[#allocation5 + $0x388] ss:$16 sps:$4 sm:$0xff]  }
  0xa5   :  { %1388 = vmatpush1.bf16.msra.mxu0 %v2610_v57  ;;  %1471 = vmatprep.subr.bf16.mxu1 %v2621_v60  ;;  %v2762_v57 = vld [vmem:[#allocation7 + $0x64] ss:$8 sps:$4 sm:$0xff]  }
  0xa6   :  { %1389 = vmatprep.subr.bf16.mxu0 %v2618_v59  ;;  %v2760_v59 = vld [vmem:[#allocation7 + $0x60] ss:$8 sps:$4 sm:$0xff]   ;;  %v2684_v60 = vld [vmem:[#allocation5 + $0x3ac] ss:$16 sps:$4 sm:$0xff]  }
  0xa8   :  { %1472 = vmatpush1.bf16.msra.mxu1 %v2619_v62  ;;  %v2682_v62 = vld [vmem:[#allocation5 + $0x3a8] ss:$16 sps:$4 sm:$0xff]  }
  0xa9   :  { %1390 = vmatpush1.bf16.msra.mxu0 %v2616_v61  ;;  %1473 = vmatprep.subr.bf16.mxu1 %v2627_v0  ;;  %v2765_v61 = vld [vmem:[#allocation7 + $0x74] ss:$8 sps:$4 sm:$0xff]  }
  0xaa   :  { %1391 = vmatprep.subr.bf16.mxu0 %v2624_v63  ;;  %v2763_v63 = vld [vmem:[#allocation7 + $0x70] ss:$8 sps:$4 sm:$0xff]   ;;  %v2687_v0 = vld [vmem:[#allocation5 + $0x3cc] ss:$16 sps:$4 sm:$0xff]  }
  0xac   :  { %1474 = vmatpush1.bf16.msra.mxu1 %v2625_v2  ;;  %v2685_v2 = vld [vmem:[#allocation5 + $0x3c8] ss:$16 sps:$4 sm:$0xff]  }
  0xad   :  { %1392 = vmatpush1.bf16.msra.mxu0 %v2622_v1  ;;  %1475 = vmatprep.subr.bf16.mxu1 %v2633_v4  ;;  %v2768_v1 = vld [vmem:[#allocation7 + $0x84] ss:$8 sps:$4 sm:$0xff]  }
  0xae   :  { %1393 = vmatprep.subr.bf16.mxu0 %v2630_v3  ;;  %v2766_v3 = vld [vmem:[#allocation7 + $0x80] ss:$8 sps:$4 sm:$0xff]   ;;  %v2690_v4 = vld [vmem:[#allocation5 + $0x3ec] ss:$16 sps:$4 sm:$0xff]  }
  0xb0   :  { %1476 = vmatpush1.bf16.msra.mxu1 %v2631_v6  ;;  %v2688_v6 = vld [vmem:[#allocation5 + $0x3e8] ss:$16 sps:$4 sm:$0xff]  }
  0xb1   :  { %1394 = vmatpush1.bf16.msra.mxu0 %v2628_v5  ;;  %1477 = vmatprep.subr.bf16.mxu1 %v2639_v9  ;;  %v2771_v5 = vld [vmem:[#allocation7 + $0x94] ss:$8 sps:$4 sm:$0xff]  }
  0xb2   :  { %1395 = vmatprep.subr.bf16.mxu0 %v2636_v7  ;;  %v2769_v7 = vld [vmem:[#allocation7 + $0x90] ss:$8 sps:$4 sm:$0xff]   ;;  %v2693_v9 = vld [vmem:[#allocation5 + $0x40c] ss:$16 sps:$4 sm:$0xff]  }
  0xb4   :  { %1478 = vmatpush1.bf16.msra.mxu1 %v2637_v12  ;;  %v2691_v12 = vld [vmem:[#allocation5 + $0x408] ss:$16 sps:$4 sm:$0xff]  }
  0xb5   :  { %1396 = vmatpush1.bf16.msra.mxu0 %v2634_v10  ;;  %1488 = vmatprep.subr.bf16.mxu1 %v2642_v14  ;;  %v2774_v10 = vld [vmem:[#allocation7 + $0xa4] ss:$8 sps:$4 sm:$0xff]   ;;  %v2772_v14 = vld [vmem:[#allocation7 + $0xa0] ss:$8 sps:$4 sm:$0xff]  }
  0xb6   :  { %1406 = vmatprep.subr.bf16.mxu0 %v2648_v15  ;;  %v2777_v15 = vld [vmem:[#allocation7 + $0xb4] ss:$8 sps:$4 sm:$0xff]  }
  0xb7   :  { %1480 = vmatmul.mubr.bf16.vlgmr.msra.gmra.mrb[4].mxu1 %v3002_v8  ;;  %v2655_v8 = vld [vmem:[#allocation5 + $0x288] ss:$16 sps:$4 sm:$0xff]  }
  0xb8   :  { %1398 = vmatmul.mubr.bf16.vlgmr.msra.gmra.mrb[0].mxu0 %v3012_v16  ;;  %1489 = vmatpush1.bf16.msra.mxu1 %v2640_v17  ;;  %v2694_v17 = vld [vmem:[#allocation5 + $0x428] ss:$16 sps:$4 sm:$0xff]  }
  0xb9   :  { %1407 = vmatpush1.bf16.msra.mxu0 %v2646_v18  ;;  %1490 = vmatprep.subr.bf16.mxu1 %v2645_v19  ;;  %v2699_v18 = vld [vmem:[#allocation5 + $0x44c] ss:$16 sps:$4 sm:$0xff]   ;;  %v2775_v19 = vld [vmem:[#allocation7 + $0xb0] ss:$8 sps:$4 sm:$0xff]  }
  0xba   :  { %1438 = vmatprep.mubr.bf16.mxu0 %v2919_v22  ;;  %1520 = vmatprep.mubr.bf16.mxu1 %v2998_v52  ;;  %v2661_v52 = vld [vmem:[#allocation5 + $0x2c8] ss:$16 sps:$4 sm:$0xff]  }
  0xbb   :  { %2023 = vmatprep.subr.bf16.mxu0 %v2744_v34  ;;  %v2715_v34 = vld [vmem:[#allocation5 + $0x508] ss:$16 sps:$4 sm:$0xff]  }
  0xbc   :  { %1491 = vmatpush1.bf16.msra.mxu1 %v2643_v20  ;;  %v2780_v20 = vld [vmem:[#allocation7 + $0xc4] ss:$8 sps:$4 sm:$0xff]  }
  0xbd   :  { %1492 = vmatprep.subr.bf16.mxu1 %v2651_v21  ;;  %v2697_v21 = vld [vmem:[#allocation5 + $0x448] ss:$16 sps:$4 sm:$0xff]  }
  0xc0   :  { %1493 = vmatpush1.bf16.msra.mxu1 %v2649_v23  ;;  %v2702_v23 = vld [vmem:[#allocation5 + $0x46c] ss:$16 sps:$4 sm:$0xff]  }
  0xc1   :  { %1494 = vmatprep.subr.bf16.mxu1 %v2654_v25  ;;  %v2783_v25 = vld [vmem:[#allocation7 + $0xd4] ss:$8 sps:$4 sm:$0xff]  }
  0xc4   :  { %2341 = vmatmul.mubr.msk.bf16.vlgmr.msra.gmra.mrb[0].mxu0 %vm1279_vm0, %v3018_v27  ;;  %1495 = vmatpush1.bf16.msra.mxu1 %v2652_v26  ;;  %v2705_v26 = vld [vmem:[#allocation5 + $0x48c] ss:$16 sps:$4 sm:$0xff]  }
  0xc5   :  { %1496 = vmatprep.subr.bf16.mxu1 %v2657_v28  ;;  %2024 = vmatpush1.bf16.msra.mxu0 %v2742_v33  ;;  %v2703_v28 = vld [vmem:[#allocation5 + $0x488] ss:$16 sps:$4 sm:$0xff]   ;;  %v2717_v33 = vld [vmem:[#allocation5 + $0x50c] ss:$16 sps:$4 sm:$0xff]  }
  0xc6   :  { %2025 = vmatprep.subr.bf16.mxu0 %v2747_v36  ;;  %v2720_v36 = vld [vmem:[#allocation5 + $0x52c] ss:$16 sps:$4 sm:$0xff]  }
  0xc8   :  { %1497 = vmatpush1.bf16.msra.mxu1 %v2655_v8  ;;  %v2708_v8 = vld [vmem:[#allocation5 + $0x4ac] ss:$16 sps:$4 sm:$0xff]  }
  0xc9   :  { %1498 = vmatprep.subr.bf16.mxu1 %v2660_v29  ;;  %2026 = vmatpush1.bf16.msra.mxu0 %v2745_v38  ;;  %v2706_v29 = vld [vmem:[#allocation5 + $0x4a8] ss:$16 sps:$4 sm:$0xff]  }
  0xca   :  { %2027 = vmatprep.subr.bf16.mxu0 %v2750_v40  ;;  %v2784_v38 = vld [vmem:[#allocation7 + $0xe0] ss:$8 sps:$4 sm:$0xff]   ;;  %v2723_v40 = vld [vmem:[#allocation5 + $0x54c] ss:$16 sps:$4 sm:$0xff]  }
  0xcc   :  { %1499 = vmatpush1.bf16.msra.mxu1 %v2658_v30  ;;  %v2711_v30 = vld [vmem:[#allocation5 + $0x4cc] ss:$16 sps:$4 sm:$0xff]  }
  0xcd   :  { %1500 = vmatprep.subr.bf16.mxu1 %v2663_v31  ;;  %2028 = vmatpush1.bf16.msra.mxu0 %v2748_v42  ;;  %v2709_v31 = vld [vmem:[#allocation5 + $0x4c8] ss:$16 sps:$4 sm:$0xff]  }
  0xce   :  { %2029 = vmatprep.subr.bf16.mxu0 %v2753_v44  ;;  %v2787_v42 = vld [vmem:[#allocation7 + $0xf0] ss:$8 sps:$4 sm:$0xff]   ;;  %v2726_v44 = vld [vmem:[#allocation5 + $0x56c] ss:$16 sps:$4 sm:$0xff]  }
  0xd0   :  { %1501 = vmatpush1.bf16.msra.mxu1 %v2661_v52  ;;  %v2714_v52 = vld [vmem:[#allocation5 + $0x4ec] ss:$16 sps:$4 sm:$0xff]  }
  0xd1   :  { %1502 = vmatprep.subr.bf16.mxu1 %v2666_v32  ;;  %2030 = vmatpush1.bf16.msra.mxu0 %v2751_v46  ;;  %v2712_v32 = vld [vmem:[#allocation5 + $0x4e8] ss:$16 sps:$4 sm:$0xff]   ;;  %v2792_v46 = vld [vmem:[#allocation7 + $0x104] ss:$8 sps:$4 sm:$0xff]  }
  0xd2   :  { %2031 = vmatprep.subr.bf16.mxu0 %v2756_v48  ;;  %v2727_v48 = vld [vmem:[#allocation5 + $0x588] ss:$16 sps:$4 sm:$0xff]  }
  0xd4   :  { %1503 = vmatpush1.bf16.msra.mxu1 %v2664_v37  ;;  %v2786_v37 = vld [vmem:[#allocation7 + $0xe4] ss:$8 sps:$4 sm:$0xff]  }
  0xd5   :  { %1504 = vmatprep.subr.bf16.mxu1 %v2669_v39  ;;  %2032 = vmatpush1.bf16.msra.mxu0 %v2754_v50  ;;  %v2718_v39 = vld [vmem:[#allocation5 + $0x528] ss:$16 sps:$4 sm:$0xff]  }
  0xd6   :  { %2033 = vmatprep.subr.bf16.mxu0 %v2759_v53  ;;  %v2730_v50 = vld [vmem:[#allocation5 + $0x5a8] ss:$16 sps:$4 sm:$0xff]  }
  0xd7   :  { %v2733_v53 = vld [vmem:[#allocation5 + $0x5c8] ss:$16 sps:$4 sm:$0xff]  }
  0xd8   :  { %1505 = vmatpush1.bf16.msra.mxu1 %v2667_v41  ;;  %v2789_v41 = vld [vmem:[#allocation7 + $0xf4] ss:$8 sps:$4 sm:$0xff]  }
  0xd9   :  { %1506 = vmatprep.subr.bf16.mxu1 %v2672_v43  ;;  %2034 = vmatpush1.bf16.msra.mxu0 %v2757_v55  ;;  %v2721_v43 = vld [vmem:[#allocation5 + $0x548] ss:$16 sps:$4 sm:$0xff]  }
  0xda   :  { %2035 = vmatprep.subr.bf16.mxu0 %v2762_v57  ;;  %v2736_v55 = vld [vmem:[#allocation5 + $0x5e8] ss:$16 sps:$4 sm:$0xff]  }
  0xdb   :  { %v2739_v57 = vld [vmem:[#allocation5 + $0x608] ss:$16 sps:$4 sm:$0xff]  }
  0xdc   :  { %1507 = vmatpush1.bf16.msra.mxu1 %v2670_v45  ;;  %v2724_v45 = vld [vmem:[#allocation5 + $0x568] ss:$16 sps:$4 sm:$0xff]  }
  0xdd   :  { %1508 = vmatprep.subr.bf16.mxu1 %v2675_v47  ;;  %2036 = vmatpush1.bf16.msra.mxu0 %v2760_v59  ;;  %v2729_v47 = vld [vmem:[#allocation5 + $0x58c] ss:$16 sps:$4 sm:$0xff]  }
  0xde   :  { %2037 = vmatprep.subr.bf16.mxu0 %v2765_v61 }
  0xe0   :  { %1509 = vmatpush1.bf16.msra.mxu1 %v2673_v49  ;;  %v2732_v49 = vld [vmem:[#allocation5 + $0x5ac] ss:$16 sps:$4 sm:$0xff]  }
  0xe1   :  { %1510 = vmatprep.subr.bf16.mxu1 %v2678_v51  ;;  %2038 = vmatpush1.bf16.msra.mxu0 %v2763_v63  ;;  %v2735_v51 = vld [vmem:[#allocation5 + $0x5cc] ss:$16 sps:$4 sm:$0xff]  }
  0xe2   :  { %2039 = vmatprep.subr.bf16.mxu0 %v2768_v1 }
  0xe4   :  { %1511 = vmatpush1.bf16.msra.mxu1 %v2676_v54  ;;  %v2738_v54 = vld [vmem:[#allocation5 + $0x5ec] ss:$16 sps:$4 sm:$0xff]  }
  0xe5   :  { %1512 = vmatprep.subr.bf16.mxu1 %v2681_v56  ;;  %2040 = vmatpush1.bf16.msra.mxu0 %v2766_v3  ;;  %v2741_v56 = vld [vmem:[#allocation5 + $0x60c] ss:$16 sps:$4 sm:$0xff]  }
  0xe6   :  { %2041 = vmatprep.subr.bf16.mxu0 %v2771_v5 }
  0xe8   :  { %1513 = vmatpush1.bf16.msra.mxu1 %v2679_v58 }
  0xe9   :  { %1514 = vmatprep.subr.bf16.mxu1 %v2684_v60  ;;  %2042 = vmatpush1.bf16.msra.mxu0 %v2769_v7 }
  0xea   :  { %2043 = vmatprep.subr.bf16.mxu0 %v2774_v10 }
  0xec   :  { %1515 = vmatpush1.bf16.msra.mxu1 %v2682_v62  ;;  %v279_v62 = vlaneseq }
  0xed   :  { %1516 = vmatprep.subr.bf16.mxu1 %v2687_v0  ;;  %2044 = vmatpush1.bf16.msra.mxu0 %v2772_v14 }
  0xee   :  { %2045 = vmatprep.subr.bf16.mxu0 %v2777_v15  ;;  %v3028_v63 = vshrl.u32 %v279_v62, 7 }
  0xf0   :  { %1517 = vmatpush1.bf16.msra.mxu1 %v2685_v2  ;;  %v3031_v0 = vsub.s32 0, %v3028_v63 }
  0xf1   :  { %1518 = vmatprep.subr.bf16.mxu1 %v2690_v4  ;;  %2046 = vmatpush1.bf16.msra.mxu0 %v2775_v19 }
  0xf2   :  { %2047 = vmatprep.subr.bf16.mxu0 %v2780_v20  ;;  %v2795_v20 = vld [vmem:[#allocation7 + $0x114] ss:$8 sps:$4 sm:$0xff]  }
  0xf4   :  { %1519 = vmatpush1.bf16.msra.mxu1 %v2688_v6 }
  0xf5   :  { %1529 = vmatprep.subr.bf16.mxu1 %v2693_v9  ;;  %2048 = vmatpush1.bf16.msra.mxu0 %v2778_v24  ;;  %v2796_v24 = vld [vmem:[#allocation7 + $0x120] ss:$8 sps:$4 sm:$0xff]  }
  0xf6   :  { %2049 = vmatprep.subr.bf16.mxu0 %v2783_v25  ;;  %v2801_v25 = vld [vmem:[#allocation7 + $0x134] ss:$8 sps:$4 sm:$0xff]  }
  0xf7   :  { %1521 = vmatmul.mubr.bf16.vlgmr.msra.gmra.mrb[4].mxu1 %v3004_v11  ;;  %v2700_v11 = vld [vmem:[#allocation5 + $0x468] ss:$16 sps:$4 sm:$0xff]  }
  0xf8   :  { %1530 = vmatpush1.bf16.msra.mxu1 %v2691_v12  ;;  %1561 = vmatprep.mubr.bf16.mxu1 %v3009_v35  ;;  %v2781_v35 = vld [vmem:[#allocation7 + $0xd0] ss:$8 sps:$4 sm:$0xff]  }
  0xf9   :  { %1531 = vmatprep.subr.bf16.mxu1 %v2696_v13  ;;  %2050 = vmatpush1.bf16.msra.mxu0 %v2781_v35  ;;  %v2802_v35 = vld [vmem:[#allocation7 + $0x140] ss:$8 sps:$4 sm:$0xff]  }
  0xfa   :  { %2051 = vmatprep.subr.bf16.mxu0 %v2786_v37  ;;  %v2822_v37 = vld [vmem:[#allocation7 + $0x1a4] ss:$8 sps:$4 sm:$0xff]  }
  0xfc   :  { %1532 = vmatpush1.bf16.msra.mxu1 %v2694_v17 }
  0xfd   :  { %1533 = vmatprep.subr.bf16.mxu1 %v2699_v18  ;;  %2052 = vmatpush1.bf16.msra.mxu0 %v2784_v38  ;;  %v2790_v18 = vld [vmem:[#allocation7 + $0x100] ss:$8 sps:$4 sm:$0xff]  }
  0xfe   :  { %2053 = vmatprep.subr.bf16.mxu0 %v2789_v41  ;;  %v2820_v38 = vld [vmem:[#allocation7 + $0x1a0] ss:$8 sps:$4 sm:$0xff]   ;;  %v2828_v41 = vld [vmem:[#allocation7 + $0x1c4] ss:$8 sps:$4 sm:$0xff]  }
 0x100   :  { %1534 = vmatpush1.bf16.msra.mxu1 %v2697_v21  ;;  %v2793_v21 = vld [vmem:[#allocation7 + $0x110] ss:$8 sps:$4 sm:$0xff]  }
 0x101   :  { %1535 = vmatprep.subr.bf16.mxu1 %v2702_v23  ;;  %2054 = vmatpush1.bf16.msra.mxu0 %v2787_v42  ;;  %v2798_v23 = vld [vmem:[#allocation7 + $0x124] ss:$8 sps:$4 sm:$0xff]   ;;  %v2826_v42 = vld [vmem:[#allocation7 + $0x1c0] ss:$8 sps:$4 sm:$0xff]  }
 0x102   :  { %2064 = vmatprep.subr.bf16.mxu0 %v2792_v46  ;;  %v2832_v46 = vld [vmem:[#allocation7 + $0x1e0] ss:$8 sps:$4 sm:$0xff]  }
 0x104   :  { %1536 = vmatpush1.bf16.msra.mxu1 %v2700_v11  ;;  %v2799_v11 = vld [vmem:[#allocation7 + $0x130] ss:$8 sps:$4 sm:$0xff]  }
 0x105   :  { %1537 = vmatprep.subr.bf16.mxu1 %v2705_v26  ;;  %v2804_v26 = vld [vmem:[#allocation7 + $0x144] ss:$8 sps:$4 sm:$0xff]  }
 0x108   :  { %1538 = vmatpush1.bf16.msra.mxu1 %v2703_v28  ;;  %v2807_v28 = vld [vmem:[#allocation7 + $0x154] ss:$8 sps:$4 sm:$0xff]  }
 0x109   :  { %1539 = vmatprep.subr.bf16.mxu1 %v2708_v8  ;;  %v2805_v8 = vld [vmem:[#allocation7 + $0x150] ss:$8 sps:$4 sm:$0xff]  }
 0x10c   :  { %1540 = vmatpush1.bf16.msra.mxu1 %v2706_v29  ;;  %v2810_v29 = vld [vmem:[#allocation7 + $0x164] ss:$8 sps:$4 sm:$0xff]  }
 0x10d   :  { %1541 = vmatprep.subr.bf16.mxu1 %v2711_v30  ;;  %v2808_v30 = vld [vmem:[#allocation7 + $0x160] ss:$8 sps:$4 sm:$0xff]  }
 0x110   :  { %1542 = vmatpush1.bf16.msra.mxu1 %v2709_v31  ;;  %v2813_v31 = vld [vmem:[#allocation7 + $0x174] ss:$8 sps:$4 sm:$0xff]  }
 0x111   :  { %1543 = vmatprep.subr.bf16.mxu1 %v2714_v52  ;;  %v2811_v52 = vld [vmem:[#allocation7 + $0x170] ss:$8 sps:$4 sm:$0xff]  }
 0x114   :  { %1544 = vmatpush1.bf16.msra.mxu1 %v2712_v32  ;;  %v2816_v32 = vld [vmem:[#allocation7 + $0x184] ss:$8 sps:$4 sm:$0xff]  }
 0x115   :  { %1545 = vmatprep.subr.bf16.mxu1 %v2717_v33  ;;  %v2814_v33 = vld [vmem:[#allocation7 + $0x180] ss:$8 sps:$4 sm:$0xff]  }
 0x118   :  { %1546 = vmatpush1.bf16.msra.mxu1 %v2715_v34  ;;  %v2819_v34 = vld [vmem:[#allocation7 + $0x194] ss:$8 sps:$4 sm:$0xff]  }
 0x119   :  { %1547 = vmatprep.subr.bf16.mxu1 %v2720_v36  ;;  %v2817_v36 = vld [vmem:[#allocation7 + $0x190] ss:$8 sps:$4 sm:$0xff]  }
 0x11c   :  { %1548 = vmatpush1.bf16.msra.mxu1 %v2718_v39  ;;  %v2825_v39 = vld [vmem:[#allocation7 + $0x1b4] ss:$8 sps:$4 sm:$0xff]  }
 0x11d   :  { %1549 = vmatprep.subr.bf16.mxu1 %v2723_v40  ;;  %v2823_v40 = vld [vmem:[#allocation7 + $0x1b0] ss:$8 sps:$4 sm:$0xff]  }
 0x120   :  { %1550 = vmatpush1.bf16.msra.mxu1 %v2721_v43  ;;  %v2831_v43 = vld [vmem:[#allocation7 + $0x1d4] ss:$8 sps:$4 sm:$0xff]  }
 0x121   :  { %1551 = vmatprep.subr.bf16.mxu1 %v2726_v44  ;;  %v2829_v44 = vld [vmem:[#allocation7 + $0x1d0] ss:$8 sps:$4 sm:$0xff]  }
 0x124   :  { %1552 = vmatpush1.bf16.msra.mxu1 %v2724_v45  ;;  %v2834_v45 = vld [vmem:[#allocation7 + $0x1e4] ss:$8 sps:$4 sm:$0xff]  }
 0x125   :  { %1553 = vmatprep.subr.bf16.mxu1 %v2729_v47  ;;  %v2837_v47 = vld [vmem:[#allocation7 + $0x1f4] ss:$8 sps:$4 sm:$0xff]  }
 0x128   :  { %1554 = vmatpush1.bf16.msra.mxu1 %v2727_v48  ;;  %v2835_v48 = vld [vmem:[#allocation7 + $0x1f0] ss:$8 sps:$4 sm:$0xff]  }
 0x129   :  { %1555 = vmatprep.subr.bf16.mxu1 %v2732_v49  ;;  %v289_v49 = vsub.s32 2, %v3028_v63 }
 0x12c   :  { %1556 = vmatpush1.bf16.msra.mxu1 %v2730_v50  ;;  %v293_v50 = vsub.s32 3, %v3028_v63 }
 0x12d   :  { %1557 = vmatprep.subr.bf16.mxu1 %v2735_v51 }
 0x130   :  { %1558 = vmatpush1.bf16.msra.mxu1 %v2733_v53 }
 0x131   :  { %1559 = vmatprep.subr.bf16.mxu1 %v2738_v54 }
 0x134   :  { %1560 = vmatpush1.bf16.msra.mxu1 %v2736_v55 }
 0x135   :  { %1570 = vmatprep.subr.bf16.mxu1 %v2741_v56 }
 0x137   :  { %1562 = vmatmul.mubr.bf16.vlgmr.msra.gmra.mrb[4].mxu1 %v3012_v16  ;;  %v3036_v16 = vld [vmem:[%s3067_s2] sm:$0xf] }
 0x138   :  { %1571 = vmatpush1.bf16.msra.mxu1 %v2739_v57  ;;  %1602 = vmatprep.mubr.bf16.mxu1 %v2919_v22  ;;  %v3039_v22 = vsub.s32 1, %v3028_v63  ;;  %v290_v51 = vrot.slane %v3036_v16, %v289_v49  ;;  %v294_v53 = vrot.slane %v3036_v16, %v293_v50  ;;  %v1691_v63 = vld [vmem:[%s3069_s4] sm:$0x3] }
 0x13a   :  { %v286_v1 = vrot.slane %v3036_v16, %v3039_v22 }
 0x143   :  { %2342 = vmatmul.mubr.msk.bf16.vlgmr.msra.gmra.mrb[4].mxu1 %vm1279_vm0, %v3018_v27  ;;  %v282_v27 = vrot.slane %v3036_v16, %v3031_v0  ;;  %v1696_v16 = vrot.slane %v1691_v63, %v3031_v0 }
 0x14a   :  { %v1317_v58 = vpop.f32.mrb[0].mxu1 }
 0x14b   :  { %v1319_v59 = vpop.f32.mrb[1].mxu1  ;;  %v1318_v2 = vadd.f32 %v1317_v58, %v282_v27 }
 0x14c   :  { %v1321_v60 = vpop.f32.mrb[2].mxu1  ;;  %v1320_v3 = vadd.f32 %v1319_v59, %v286_v1 }
 0x14d   :  { %v1322_v61 = vpop.f32.mrb[3].mxu1 }
 0x197   :  { %v1440_v4 = vpop.f32.mrb[0].mxu0 }
 0x198   :  { %v2409_v5 = vadd.f32 %v1440_v4, %v1318_v2  ;;  %v1442_v6 = vpop.f32.mrb[1].mxu0  ;;  %v2111_v4 = vld [vmem:[%s3070_s5] sm:$0x3] }
 0x199   :  { %v2411_v7 = vadd.f32 %v1442_v6, %v1320_v3  ;;  %v1444_v9 = vpop.f32.mrb[2].mxu0  ;;  %v1700_v3 = vrot.slane %v1691_v63, %v3039_v22 }
 0x19a   :  { %vm1611_vm1 = vcmp.gt.f32.partialorder %v2409_v5, 0.0  ;;  %v1615_v10 = vmul.f32 0.01, %v2409_v5  ;;  %v1445_v12 = vpop.f32.mrb[3].mxu0 }
 0x19b   :  { %vm1612_vm2 = vcmp.gt.f32.partialorder %v2411_v7, 0.0  ;;  %v1616_v13 = vmul.f32 0.01, %v2411_v7  ;;  %v2116_v12 = vrot.slane %v2111_v4, %v3031_v0 }
 0x19c   :  { %v1619_v14 = vsel %vm1611_vm1, %v2409_v5, %v1615_v10 }
 0x19d   :  { %v1620_v15 = vsel %vm1612_vm2, %v2411_v7, %v1616_v13  ;;  %v1623_v19 = vpack.c.bf16 %v1619_v14, %v1619_v14 }
 0x19e   :  { %v1624_v17 = vpack.c.bf16 %v1620_v15, %v1620_v15  ;;  %v2120_v15 = vrot.slane %v2111_v4, %v3039_v22 }
 0x1a0   :  { %2055 = vmatprep.mubr.bf16.mxu0 %v1624_v17 }
 0x1a1   :  { %2056 = vmatmul.mubr.bf16.vlgmr.msra.gmra.mrb[4].mxu0 %v1623_v19 }
 0x1a2   :  { %2065 = vmatpush1.bf16.msra.mxu0 %v2790_v18 }
 0x1a3   :  { %2066 = vmatprep.subr.bf16.mxu0 %v2795_v20 }
 0x1a6   :  { %2067 = vmatpush1.bf16.msra.mxu0 %v2793_v21 }
 0x1a7   :  { %2068 = vmatprep.subr.bf16.mxu0 %v2798_v23 }
 0x1aa   :  { %2069 = vmatpush1.bf16.msra.mxu0 %v2796_v24  ;;  %v2129_v24 = vstv %s3071_s6 }
 0x1ab   :  { %2070 = vmatprep.subr.bf16.mxu0 %v2801_v25 }
 0x1ae   :  { %2071 = vmatpush1.bf16.msra.mxu0 %v2799_v11 }
 0x1af   :  { %2072 = vmatprep.subr.bf16.mxu0 %v2804_v26 }
 0x1b2   :  { %2073 = vmatpush1.bf16.msra.mxu0 %v2802_v35 }
 0x1b3   :  { %2074 = vmatprep.subr.bf16.mxu0 %v2807_v28 }
 0x1b6   :  { %2075 = vmatpush1.bf16.msra.mxu0 %v2805_v8 }
 0x1b7   :  { %2076 = vmatprep.subr.bf16.mxu0 %v2810_v29 }
 0x1ba   :  { %2077 = vmatpush1.bf16.msra.mxu0 %v2808_v30 }
 0x1bb   :  { %2078 = vmatprep.subr.bf16.mxu0 %v2813_v31 }
 0x1be   :  { %2079 = vmatpush1.bf16.msra.mxu0 %v2811_v52 }
 0x1bf   :  { %2080 = vmatprep.subr.bf16.mxu0 %v2816_v32 }
 0x1c2   :  { %2081 = vmatpush1.bf16.msra.mxu0 %v2814_v33 }
 0x1c3   :  { %2082 = vmatprep.subr.bf16.mxu0 %v2819_v34 }
 0x1c6   :  { %2083 = vmatpush1.bf16.msra.mxu0 %v2817_v36 }
 0x1c7   :  { %2084 = vmatprep.subr.bf16.mxu0 %v2822_v37 }
 0x1ca   :  { %2085 = vmatpush1.bf16.msra.mxu0 %v2820_v38 }
 0x1cb   :  { %2086 = vmatprep.subr.bf16.mxu0 %v2825_v39 }
 0x1ce   :  { %2087 = vmatpush1.bf16.msra.mxu0 %v2823_v40 }
 0x1cf   :  { %2088 = vmatprep.subr.bf16.mxu0 %v2828_v41 }
 0x1d2   :  { %2089 = vmatpush1.bf16.msra.mxu0 %v2826_v42 }
 0x1d3   :  { %2090 = vmatprep.subr.bf16.mxu0 %v2831_v43 }
 0x1d6   :  { %2091 = vmatpush1.bf16.msra.mxu0 %v2829_v44 }
 0x1d7   :  { %2092 = vmatprep.subr.bf16.mxu0 %v2834_v45 }
 0x1da   :  { %2093 = vmatpush1.bf16.msra.mxu0 %v2832_v46 }
 0x1db   :  { %2094 = vmatprep.subr.bf16.mxu0 %v2837_v47 }
 0x1de   :  { %2095 = vmatpush1.bf16.msra.mxu0 %v2835_v48 }
 0x216   :  { %v1604_v54 = vpop.f32.mrb[4].mxu1 }
 0x217   :  { %v2412_v55 = vadd.f32 %v1604_v54, %v290_v51  ;;  %v1606_v56 = vpop.f32.mrb[5].mxu1 }
 0x218   :  { %v2413_v57 = vadd.f32 %v1606_v56, %v294_v53  ;;  %v1608_v58 = vpop.f32.mrb[6].mxu1 }
 0x219   :  { %vm1613_vm3 = vcmp.gt.f32.partialorder %v2412_v55, 0.0  ;;  %v1617_v59 = vmul.f32 0.01, %v2412_v55  ;;  %v1609_v60 = vpop.f32.mrb[7].mxu1 }
 0x21a   :  { %vm1614_vm4 = vcmp.gt.f32.partialorder %v2413_v57, 0.0  ;;  %v1618_v61 = vmul.f32 0.01, %v2413_v57 }
 0x21b   :  { %v1621_v62 = vsel %vm1613_vm3, %v2412_v55, %v1617_v59 }
 0x21c   :  { %v1622_v27 = vsel %vm1614_vm4, %v2413_v57, %v1618_v61  ;;  %v1625_v2 = vpack.c.bf16 %v1621_v62, %v1621_v62 }
 0x21d   :  { %v1626_v1 = vpack.c.bf16 %v1622_v27, %v1622_v27 }
 0x21f   :  { %2096 = vmatprep.mubr.bf16.mxu0 %v1626_v1 }
 0x220   :  { %2097 = vmatmul.mubr.bf16.vlgmr.msra.gmra.mrb[4].mxu0 %v1625_v2 }
 0x2f3   :  { %v2098_v5 = vpop.f32.mrb[4].mxu0 }
 0x2f4   :  { %v2414_v6 = vadd.f32 %v2098_v5, %v1696_v16  ;;  %v2100_v7 = vpop.f32.mrb[5].mxu0 }
 0x2f5   :  { %v2415_v9 = vadd.f32 %v2100_v7, %v1700_v3  ;;  %v2102_v10 = vpop.f32.mrb[6].mxu0 }
 0x2f6   :  { %vm2105_vm5 = vcmp.gt.f32.partialorder %v2414_v6, 0.0  ;;  %v2107_v13 = vmul.f32 0.01, %v2414_v6  ;;  %v2103_v14 = vpop.f32.mrb[7].mxu0 }
 0x2f7   :  { %vm2106_vm6 = vcmp.gt.f32.partialorder %v2415_v9, 0.0  ;;  %v2108_v17 = vmul.f32 0.01, %v2415_v9 }
 0x2f8   :  { %v2109_v18 = vsel %vm2105_vm5, %v2414_v6, %v2107_v13 }
 0x2f9   :  { %v2110_v19 = vsel %vm2106_vm6, %v2415_v9, %v2108_v17  ;;  %v2123_v20 = vmul.f32 %v2116_v12, %v2109_v18 }
 0x2fa   :  { %v2124_v21 = vmul.f32 %v2120_v15, %v2110_v19 }
 0x2fc   :  { %v2125_v23 = vadd.f32 %v2124_v21, %v2123_v20 }
 0x2fe   :  { %2126 = vadd.xlane.f32.xlu0 %v2125_v23 }
 0x38b   :  { %v2127_v25 = vpop.xlane.xlu0 %2126 }
 0x38c   :  { %v2130_v11 = vadd.f32 %v2129_v24, %v2127_v25 }
 0x38e   :  { %v2407_v0 = vmul.f32 -1.442695, %v2130_v11 }
 0x390   :  { %2838 = vpow2.f32 %v2407_v0 }
 0x39a   :  { %v2839_v26 = vpop.eup %2838 }
 0x39b   :  { %v2134_v35 = vadd.f32 1.0, %v2839_v26 }
 0x39d   :  { %2840 = vrcp.f32 %v2134_v35 }
 0x3a7   :  { %v2841_v22 = vpop.eup %2840 }
 0x3a8   :  { %2138 = vst.msk [vmem:[%s3072_s7] sm:$0xff] %vm2137_vm7, %v2841_v22 }
 0x3a9   :  { %2143 = vsyncpa [#allocation4], 1 }
 0x3aa   :  { %2144 = vsyncpa [#allocation6], 1 }

</bundles_post_ra>
